<compile_context>
chip_gen: v7x
topology: tpu7x:2x2x1
jax: 0.10.0
libtpu: 0.0.40
codegen_flags: <defaults>
</compile_context>

<pallas_src>
import functools

import jax
import jax.numpy as jnp
from jax.experimental import pallas as pl
from jax.experimental.pallas import tpu as pltpu


def _round_up(n, m):
    return ((n + m - 1) // m) * m


def make_actor_layout(input_dim, hidden_dims, output_dim):
    """Row offsets of each (pre-transposed) parameter inside the packed
    (rows, C) buffer.  Sections start on 8-row (sublane) boundaries so the
    static in-kernel slices are tile-aligned; C is lane-padded to 128."""
    assert len(hidden_dims) == 2, "kernel is specialized to 2 hidden layers"
    h1, h2 = hidden_dims
    head_rows = _round_up(2 * output_dim, 8)
    C = _round_up(max(input_dim, h1, h2, 128), 128)
    w1 = 0                                   # (h1, input_dim)   = W1^T
    b1 = _round_up(w1 + h1, 8)               # (h1, 1)
    w2 = _round_up(b1 + h1, 8)               # (h2, h1)          = W2^T
    b2 = _round_up(w2 + h2, 8)               # (h2, 1)
    wh = _round_up(b2 + h2, 8)               # (head_rows, h2)   = [Wm || Ws]^T, zero-padded rows
    bh = _round_up(wh + head_rows, 8)        # (head_rows, 1)
    rows = _round_up(bh + head_rows, 8)
    return dict(C=C, rows=rows, head_rows=head_rows,
                w1=w1, b1=b1, w2=w2, b2=b2, wh=wh, bh=bh)


def pack_actor_params(params, layout):
    """Pack all weights/biases (pre-transposed, feature-major) into ONE f32
    buffer (single input DMA).  Call once outside the hot path."""
    buf = jnp.zeros((layout["rows"], layout["C"]), jnp.float32)

    def put(b, row, arr):
        r, c = arr.shape
        return b.at[row:row + r, 0:c].set(arr.astype(jnp.float32))

    buf = put(buf, layout["w1"], params["w1"].T)                     # (h1, in)
    buf = put(buf, layout["b1"], params["b1"].reshape(-1, 1))        # (h1, 1)
    buf = put(buf, layout["w2"], params["w2"].T)                     # (h2, h1)
    buf = put(buf, layout["b2"], params["b2"].reshape(-1, 1))        # (h2, 1)
    wh = jnp.concatenate([params["wm"], params["ws"]], axis=1).T     # (2*out, h2)
    bh = jnp.concatenate([params["bm"], params["bs"]], axis=1).reshape(-1, 1)
    buf = put(buf, layout["wh"], wh)
    buf = put(buf, layout["bh"], bh)
    return buf


def _actor_kernel(x_ref, p_ref, mean_ref, std_ref, *,
                  input_dim, h1, h2, out_dim, lay):
    x = x_ref[...]                                      # (input_dim, bb), batch on lanes

    # ---- layer 1: K=input_dim is tiny -> unrolled outer-product FMA (VPU) --
    acc = p_ref[lay["b1"]:lay["b1"] + h1, 0:1]          # (h1, 1) bias
    for k in range(input_dim):                          # static unroll
        wk = p_ref[lay["w1"]:lay["w1"] + h1, k:k + 1]   # (h1, 1) weight column
        acc = acc + wk * x[k:k + 1, :]                  # (h1,1)*(1,bb) -> (h1,bb)
    h = jnp.maximum(acc, 0.0)

    # ---- layer 2: Linear + ReLU on the MXU (feature-major) -----------------
    w2 = p_ref[lay["w2"]:lay["w2"] + h2, 0:h1]          # (h2, h1)
    b2 = p_ref[lay["b2"]:lay["b2"] + h2, 0:1]           # (h2, 1)
    h = jnp.maximum(jnp.dot(w2, h, preferred_element_type=jnp.float32) + b2, 0.0)

    # ---- fused mean/std head: one 8-row-padded matmul, split epilogue ------
    hr = lay["head_rows"]
    wh = p_ref[lay["wh"]:lay["wh"] + hr, 0:h2]          # (hr, h2), rows >= 2*out are zero
    z = jnp.dot(wh, h, preferred_element_type=jnp.float32)   # (hr, bb)
    bm = p_ref[lay["bh"] + 0:lay["bh"] + out_dim, 0:1]
    bs = p_ref[lay["bh"] + out_dim:lay["bh"] + 2 * out_dim, 0:1]
    zm = z[0:out_dim, :] + bm                           # (out_dim, bb)
    zs = z[out_dim:2 * out_dim, :] + bs                 # (out_dim, bb)

    # tanh only on mean rows, exp/log1p only on std rows; both stores lane-dense
    mean_ref[...] = 2.0 * jnp.tanh(zm)
    # softplus matching torch.nn.functional.softplus (threshold=20)
    std_ref[...] = jnp.where(zs > 20.0, zs,
                             jnp.log1p(jnp.exp(jnp.minimum(zs, 20.0))))


def _choose_block_b(B, block_b):
    if block_b is not None:
        bb = min(block_b, B)
    elif B <= 1024:
        bb = B          # small batch: single block
    else:
        bb = 512        # >1 grid step: DMA/compute overlap + v7x megacore sharding
    assert B % bb == 0 and (bb % 128 == 0 or bb == B), (
        "batch tile must divide B and be a multiple of 128 (or the whole batch)")
    return bb


def make_actor_forward(input_dim, hidden_dims, output_dim, block_b=None):
    """Build a jitted forward(state, packed_params) -> (mean, std)."""
    h1, h2 = hidden_dims
    lay = make_actor_layout(input_dim, hidden_dims, output_dim)
    kernel = functools.partial(_actor_kernel, input_dim=input_dim,
                               h1=h1, h2=h2, out_dim=output_dim, lay=lay)

    @jax.jit
    def forward(state, packed):
        B = state.shape[0]
        bb = _choose_block_b(B, block_b)
        grid = (B // bb,)

        # batch-on-lanes: tiny XLA transpose outside the kernel
        x_t = jnp.transpose(state).astype(jnp.float32)        # (input_dim, B)

        mean_t, std_t = pl.pallas_call(
            kernel,
            out_shape=(
                jax.ShapeDtypeStruct((output_dim, B), jnp.float32),
                jax.ShapeDtypeStruct((output_dim, B), jnp.float32),
            ),
            grid_spec=pltpu.PrefetchScalarGridSpec(
                num_scalar_prefetch=0,
                grid=grid,
                in_specs=[
                    pl.BlockSpec((input_dim, bb), lambda i: (0, i)),
                    # packed params: same block every step -> stays VMEM-resident
                    pl.BlockSpec((lay["rows"], lay["C"]), lambda i: (0, 0)),
                ],
                out_specs=[
                    pl.BlockSpec((output_dim, bb), lambda i: (0, i)),
                    pl.BlockSpec((output_dim, bb), lambda i: (0, i)),
                ],
            ),
            compiler_params=pltpu.CompilerParams(
                dimension_semantics=("parallel",)),
        )(x_t, packed)

        return jnp.transpose(mean_t), jnp.transpose(std_t)    # (B, out_dim) each

    return forward


def init_actor_params(key, input_dim, hidden_dims, output_dim):
    """PyTorch-style Linear init: U(-1/sqrt(fan_in), 1/sqrt(fan_in)).
    Weights stored as (in, out); packing transposes them to feature-major."""
    assert len(hidden_dims) == 2, "kernel is specialized to 2 hidden layers"

    def linear(k, fan_in, fan_out):
        kw, kb = jax.random.split(k)
        bound = 1.0 / (fan_in ** 0.5)
        w = jax.random.uniform(kw, (fan_in, fan_out), jnp.float32, -bound, bound)
        b = jax.random.uniform(kb, (1, fan_out), jnp.float32, -bound, bound)
        return w, b

    k1, k2, k3, k4 = jax.random.split(key, 4)
    w1, b1 = linear(k1, input_dim, hidden_dims[0])
    w2, b2 = linear(k2, hidden_dims[0], hidden_dims[1])
    wm, bm = linear(k3, hidden_dims[1], output_dim)
    ws, bs = linear(k4, hidden_dims[1], output_dim)
    return dict(w1=w1, b1=b1, w2=w2, b2=b2, wm=wm, bm=bm, ws=ws, bs=bs)


def actor_forward_ref(state, p):
    """Pure-JAX reference for correctness checking."""
    h = jnp.maximum(state @ p["w1"] + p["b1"], 0.0)
    h = jnp.maximum(h @ p["w2"] + p["b2"], 0.0)
    mean = 2.0 * jnp.tanh(h @ p["wm"] + p["bm"])
    s = h @ p["ws"] + p["bs"]
    std = jnp.where(s > 20.0, s, jnp.log1p(jnp.exp(jnp.minimum(s, 20.0))))
    return mean, std


if __name__ == "__main__":
    # Pendulum-v1: state dim 3, action dim 1; small hidden dims.
    INPUT_DIM = 3
    HIDDEN_DIMS = [32, 32]
    OUTPUT_DIM = 1
    BATCH = 8     # amortize launch/DMA overhead in the RL loop by batching many
                  # states/rollout steps per call (throughput scales ~linearly).

    key = jax.random.PRNGKey(0)
    k_params, k_state, k_state2 = jax.random.split(key, 3)
    params = init_actor_params(k_params, INPUT_DIM, HIDDEN_DIMS, OUTPUT_DIM)
    state = jax.random.normal(k_state, (BATCH, INPUT_DIM), jnp.float32)

    layout = make_actor_layout(INPUT_DIM, HIDDEN_DIMS, OUTPUT_DIM)
    packed = pack_actor_params(params, layout)          # one-time packing
    packed = jax.block_until_ready(packed)

    # --- small single-block case ---------------------------------------
    actor_forward = make_actor_forward(INPUT_DIM, HIDDEN_DIMS, OUTPUT_DIM)
    mean, std = actor_forward(state, packed)
    jax.block_until_ready((mean, std))

    mean_ref, std_ref = actor_forward_ref(state, params)
    assert mean.shape == (BATCH, OUTPUT_DIM) and std.shape == (BATCH, OUTPUT_DIM)
    assert jnp.allclose(mean, mean_ref, atol=1e-5, rtol=1e-5)
    assert jnp.allclose(std, std_ref, atol=1e-5, rtol=1e-5)
    assert bool(jnp.all(std > 0.0))

    # --- multi-step grid case (exercises the batch tiling / lane blocks) ---
    B2 = 256
    state2 = jax.random.normal(k_state2, (B2, INPUT_DIM), jnp.float32)
    actor_forward_tiled = make_actor_forward(INPUT_DIM, HIDDEN_DIMS, OUTPUT_DIM,
                                             block_b=128)
    mean2, std2 = actor_forward_tiled(state2, packed)
    jax.block_until_ready((mean2, std2))
    mean2_ref, std2_ref = actor_forward_ref(state2, params)
    assert jnp.allclose(mean2, mean2_ref, atol=1e-5, rtol=1e-5)
    assert jnp.allclose(std2, std2_ref, atol=1e-5, rtol=1e-5)

    print("KERNEL_OK")
</pallas_src>

<mosaic_0001>
module attributes {stable_mosaic.version = 11 : i64} {
  func.func @_actor_kernel(%arg0: i32, %arg1: memref<3x8xf32, #tpu.memory_space<vmem>>, %arg2: memref<144x128xf32, #tpu.memory_space<vmem>>, %arg3: memref<1x8xf32, #tpu.memory_space<vmem>>, %arg4: memref<1x8xf32, #tpu.memory_space<vmem>>) attributes {dimension_semantics = [#tpu.dimension_semantics<parallel>], iteration_bounds = array<i64: 1>, scalar_prefetch = 0 : i64, scratch_operands = 0 : i64, tpu.core_type = #tpu.core_type<tc>, window_params = [{transform_indices = @transform_0, window_bounds = array<i64: 3, 8>}, {pipeline_mode = #tpu.pipeline_mode<synchronous>, transform_indices = @transform_1, window_bounds = array<i64: 144, 128>}, {transform_indices = @transform_2, window_bounds = array<i64: 1, 8>}, {transform_indices = @transform_3, window_bounds = array<i64: 1, 8>}]} {
    %c0 = arith.constant 0 : index
    %c0_0 = arith.constant 0 : index
    %0 = vector.load %arg1[%c0, %c0_0] : memref<3x8xf32, #tpu.memory_space<vmem>>, vector<3x8xf32>
    %c32 = arith.constant 32 : index
    %c0_1 = arith.constant 0 : index
    %1 = vector.load %arg2[%c32, %c0_1] : memref<144x128xf32, #tpu.memory_space<vmem>>, vector<32x1xf32>
    %c0_2 = arith.constant 0 : index
    %c0_3 = arith.constant 0 : index
    %2 = vector.load %arg2[%c0_2, %c0_3] : memref<144x128xf32, #tpu.memory_space<vmem>>, vector<32x1xf32>
    %3 = vector.extract_strided_slice %0 {offsets = [0, 0], sizes = [1, 8], strides = [1, 1]} : vector<3x8xf32> to vector<1x8xf32>
    %4 = vector.broadcast %2 : vector<32x1xf32> to vector<32x8xf32>
    %5 = vector.broadcast %3 : vector<1x8xf32> to vector<32x8xf32>
    %6 = arith.mulf %4, %5 : vector<32x8xf32>
    %7 = vector.broadcast %1 : vector<32x1xf32> to vector<32x8xf32>
    %8 = arith.addf %7, %6 : vector<32x8xf32>
    %c0_4 = arith.constant 0 : index
    %c1 = arith.constant 1 : index
    %9 = vector.load %arg2[%c0_4, %c1] : memref<144x128xf32, #tpu.memory_space<vmem>>, vector<32x1xf32>
    %10 = vector.extract_strided_slice %0 {offsets = [1, 0], sizes = [1, 8], strides = [1, 1]} : vector<3x8xf32> to vector<1x8xf32>
    %11 = vector.broadcast %9 : vector<32x1xf32> to vector<32x8xf32>
    %12 = vector.broadcast %10 : vector<1x8xf32> to vector<32x8xf32>
    %13 = arith.mulf %11, %12 : vector<32x8xf32>
    %14 = arith.addf %8, %13 : vector<32x8xf32>
    %c0_5 = arith.constant 0 : index
    %c2 = arith.constant 2 : index
    %15 = vector.load %arg2[%c0_5, %c2] : memref<144x128xf32, #tpu.memory_space<vmem>>, vector<32x1xf32>
    %16 = vector.extract_strided_slice %0 {offsets = [2, 0], sizes = [1, 8], strides = [1, 1]} : vector<3x8xf32> to vector<1x8xf32>
    %17 = vector.broadcast %15 : vector<32x1xf32> to vector<32x8xf32>
    %18 = vector.broadcast %16 : vector<1x8xf32> to vector<32x8xf32>
    %19 = arith.mulf %17, %18 : vector<32x8xf32>
    %20 = arith.addf %14, %19 : vector<32x8xf32>
    %cst = arith.constant 0.000000e+00 : f32
    %21 = vector.broadcast %cst : f32 to vector<32x8xf32>
    %22 = arith.maximumf %20, %21 : vector<32x8xf32>
    %c64 = arith.constant 64 : index
    %c0_6 = arith.constant 0 : index
    %23 = vector.load %arg2[%c64, %c0_6] : memref<144x128xf32, #tpu.memory_space<vmem>>, vector<32x32xf32>
    %c96 = arith.constant 96 : index
    %c0_7 = arith.constant 0 : index
    %24 = vector.load %arg2[%c96, %c0_7] : memref<144x128xf32, #tpu.memory_space<vmem>>, vector<32x1xf32>
    %cst_8 = arith.constant dense<0.000000e+00> : vector<32x8xf32>
    %25 = tpu.matmul %23, %22, %cst_8 {dimension_numbers = #tpu.dot_dimension_numbers<[1], [0], [0], [1], [0, 0, 1, 1], [], []>} : vector<32x32xf32>, vector<32x8xf32>, vector<32x8xf32> -> vector<32x8xf32>
    %26 = vector.broadcast %24 : vector<32x1xf32> to vector<32x8xf32>
    %27 = arith.addf %25, %26 : vector<32x8xf32>
    %cst_9 = arith.constant 0.000000e+00 : f32
    %28 = vector.broadcast %cst_9 : f32 to vector<32x8xf32>
    %29 = arith.maximumf %27, %28 : vector<32x8xf32>
    %c128 = arith.constant 128 : index
    %c0_10 = arith.constant 0 : index
    %30 = vector.load %arg2[%c128, %c0_10] : memref<144x128xf32, #tpu.memory_space<vmem>>, vector<8x32xf32>
    %cst_11 = arith.constant dense<0.000000e+00> : vector<8x8xf32>
    %31 = tpu.matmul %30, %29, %cst_11 {dimension_numbers = #tpu.dot_dimension_numbers<[1], [0], [0], [1], [0, 0, 1, 1], [], []>} : vector<8x32xf32>, vector<32x8xf32>, vector<8x8xf32> -> vector<8x8xf32>
    %c136 = arith.constant 136 : index
    %c0_12 = arith.constant 0 : index
    %32 = vector.load %arg2[%c136, %c0_12] : memref<144x128xf32, #tpu.memory_space<vmem>>, vector<1x1xf32>
    %c137 = arith.constant 137 : index
    %c0_13 = arith.constant 0 : index
    %33 = vector.load %arg2[%c137, %c0_13] : memref<144x128xf32, #tpu.memory_space<vmem>>, vector<1x1xf32>
    %34 = vector.extract_strided_slice %31 {offsets = [0, 0], sizes = [1, 8], strides = [1, 1]} : vector<8x8xf32> to vector<1x8xf32>
    %35 = vector.broadcast %32 : vector<1x1xf32> to vector<1x8xf32>
    %36 = arith.addf %34, %35 : vector<1x8xf32>
    %37 = vector.extract_strided_slice %31 {offsets = [1, 0], sizes = [1, 8], strides = [1, 1]} : vector<8x8xf32> to vector<1x8xf32>
    %38 = vector.broadcast %33 : vector<1x1xf32> to vector<1x8xf32>
    %39 = arith.addf %37, %38 : vector<1x8xf32>
    %40 = math.tanh %36 : vector<1x8xf32>
    %cst_14 = arith.constant 2.000000e+00 : f32
    %41 = vector.broadcast %cst_14 : f32 to vector<1x8xf32>
    %42 = arith.mulf %41, %40 : vector<1x8xf32>
    %c0_15 = arith.constant 0 : index
    %c0_16 = arith.constant 0 : index
    %43 = vector.load %arg3[%c0_15, %c0_16] : memref<1x8xf32, #tpu.memory_space<vmem>>, vector<1x8xf32>
    tpu.vector_store %arg3[%c0_15, %c0_16], %42 {strides = array<i32>} : memref<1x8xf32, #tpu.memory_space<vmem>>, vector<1x8xf32>,
    %cst_17 = arith.constant 2.000000e+01 : f32
    %44 = vector.broadcast %cst_17 : f32 to vector<1x8xf32>
    %45 = arith.cmpf ogt, %39, %44 : vector<1x8xf32>
    %cst_18 = arith.constant 2.000000e+01 : f32
    %46 = vector.broadcast %cst_18 : f32 to vector<1x8xf32>
    %47 = arith.minimumf %39, %46 : vector<1x8xf32>
    %48 = math.exp %47 : vector<1x8xf32>
    %49 = math.log1p %48 : vector<1x8xf32>
    %50 = arith.select %45, %39, %49 : vector<1x8xi1>, vector<1x8xf32>
    %c0_19 = arith.constant 0 : index
    %c0_20 = arith.constant 0 : index
    %51 = vector.load %arg4[%c0_19, %c0_20] : memref<1x8xf32, #tpu.memory_space<vmem>>, vector<1x8xf32>
    tpu.vector_store %arg4[%c0_19, %c0_20], %50 {strides = array<i32>} : memref<1x8xf32, #tpu.memory_space<vmem>>, vector<1x8xf32>,
    return
  }
  func.func @transform_0(%arg0: i32) -> (i32, i32) {
    %c0_i32 = arith.constant 0 : i32
    %c0_i32_0 = arith.constant 0 : i32
    return %c0_i32, %arg0 : i32, i32
  }
  func.func @transform_1(%arg0: i32) -> (i32, i32) {
    %c0_i32 = arith.constant 0 : i32
    %c0_i32_0 = arith.constant 0 : i32
    %c0_i32_1 = arith.constant 0 : i32
    return %c0_i32, %c0_i32_0 : i32, i32
  }
  func.func @transform_2(%arg0: i32) -> (i32, i32) {
    %c0_i32 = arith.constant 0 : i32
    %c0_i32_0 = arith.constant 0 : i32
    return %c0_i32, %arg0 : i32, i32
  }
  func.func @transform_3(%arg0: i32) -> (i32, i32) {
    %c0_i32 = arith.constant 0 : i32
    %c0_i32_0 = arith.constant 0 : i32
    return %c0_i32, %arg0 : i32, i32
  }
}

</mosaic_0001>

<bundles_post_ra>
// kernel: forward.1
= control target key start
LH: loop header
LB: loop body
LE: loop exit
PB: predicated region body
PF: predicated region fallthrough
CT: control target
= control target key end

     0   :  { %9 = vsyncpa [#allocation3], 0  ;;  %s706_s0 = inlined_call_operand.hbm [shape: f32[3,8], index: 0, kind: input, shape index: {}]   ;;  %s707_s1 = inlined_call_operand.hbm [shape: f32[144,128], index: 1, kind: input, shape index: {}]   ;;  %s708_s2 = inlined_call_operand.hbm [shape: f32[1,8], index: 2, kind: output, shape index: {0}]   ;;  %s709_s3 = inlined_call_operand.hbm [shape: f32[1,8], index: 3, kind: output, shape index: {1}]  }
   0x1   :  { %10 = vsyncpa [#allocation6], 0 }
   0x2   :  { %11 = vsyncpa [#allocation4], 0 }
   0x3   :  { %12 = vsyncpa [#allocation9], 0  ;;  %s614_s12 = smov [#allocation2]   ;;  %s615_s14 = smov [#allocation5]  }
   0x4   :  { %s19_s13 = sshll.u32 %s614_s12, 4  ;;  %s28_s15 = sshll.u32 %s615_s14, 4  ;;  %s20_s13 = int_to_ptr.vmem [resolvable:$true] %s19_s13  ;;  %s646_s15 = int_to_ptr.vmem [resolvable:$true] %s28_s15 }
   0x5   :  { %s518_s18 = scalar_lea.hbm %s706_s0, 64 }
   0x6   :  { %p519_p0 = scmp.ne.s32.totalorder %s706_s0, %s518_s18  ;;  %p522_p1 = scmp.lt.u32.totalorder %s518_s18, %s706_s0 }
   0x8   :  { %p524_p2 = pnand %p522_p1, %p519_p0 }
   0xa   :  { %527 = shalt.err (!%p524_p2)
}
   0xb   :  { %s528_s23 = scalar_lea.vmem %s20_s13, 64  ;;  %p533_p4 = scmp.lt.s32.totalorder %s20_s13, %s20_s13 }
   0xc   :  { %p529_p3 = scmp.ne.s32.totalorder %s20_s13, %s528_s23  ;;  %p534_p5 = scmp.lt.s32.totalorder %s528_s23, %s528_s23 }
   0xe   :  { %p535_p6 = por %p534_p5, %p533_p4 }
  0x10   :  { %p536_p7 = pnand %p535_p6, %p529_p3 }
  0x12   :  { %539 = shalt.err (!%p536_p7)
}
  0x13   :  { %22 = dma.hbm_to_vmem [thread:$0]  %s706_s0, 64, %s20_s13, [#allocation3]  }
  0x14   :  { %s540_s28 = scalar_lea.hbm %s707_s1, 2304 }
  0x15   :  { %p541_p8 = scmp.ne.s32.totalorder %s707_s1, %s540_s28  ;;  %p544_p9 = scmp.lt.u32.totalorder %s540_s28, %s707_s1 }
  0x17   :  { %p546_p10 = pnand %p544_p9, %p541_p8 }
  0x19   :  { %549 = shalt.err (!%p546_p10)
}
  0x1a   :  { %s550_s6 = scalar_lea.vmem %s646_s15, 2304  ;;  %p555_p12 = scmp.lt.s32.totalorder %s646_s15, %s646_s15 }
  0x1b   :  { %p551_p11 = scmp.ne.s32.totalorder %s646_s15, %s550_s6  ;;  %p556_p13 = scmp.lt.s32.totalorder %s550_s6, %s550_s6 }
  0x1d   :  { %p557_p0 = por %p556_p13, %p555_p12 }
  0x1f   :  { %p558_p1 = pnand %p557_p0, %p551_p11 }
  0x21   :  { %561 = shalt.err (!%p558_p1)
}
  0x22   :  { %s616_s0 = smov 128   ;;  %s617_s7 = smov 8  }
  0x23   :  { %34 = dma.hbm_to_vmem [thread:$0]  %s707_s1, 2304, %s646_s15, [#allocation6], %s616_s0, %s616_s0, %s617_s7  }
  0x24   :  { %606 = dma.done.wait [#allocation3], 64  }
  0x25   :  { %607 = vsyncadd [#allocation3], 4294967232 }
  0x26   :  { %608 = dma.done.wait [#allocation6], 2304  }
  0x27   :  { %609 = vsyncadd [#allocation6], 4294964992  ;;  %v618_v0 = vmov 0   ;;  %v46_v1 = vld [vmem:[#allocation5] sm:$0xff]  ;;  %v47_v3 = vld [vmem:[#allocation5 + $0x8] sm:$0xff]  ;;  %v619_v6 = vmov 1   ;;  %v70_v18 = vlaneseq }
  0x28   :  { %501 = vset.pattern.permute.xlu1 %v618_v0  ;;  %500 = vset.pattern.permute.xlu0 %v618_v0  ;;  %v42_v2 = vld [vmem:[#allocation5 + $0x20] sm:$0xff]  ;;  %v43_v4 = vld [vmem:[#allocation5 + $0x28] sm:$0xff]  ;;  %v49_v5 = vld [vmem:[#allocation5 + $0x18] sm:$0xff]  ;;  %v620_v9 = vmov 2   ;;  %vm190_vm0 = vcmask 261120   ;;  %vm622_vm1 = vmmov 0  }
  0x29   :  { %52 = vperm.xlu0 %500, %v46_v1   ;;  %80 = vperm.xlu1 %501, %v42_v2   ;;  %v44_v7 = vld [vmem:[#allocation5 + $0x30] sm:$0xff]  ;;  %v45_v10 = vld [vmem:[#allocation5 + $0x38] sm:$0xff]  ;;  %v162_v11 = vld [vmem:[#allocation5 + $0x40] sm:$0xff]  ;;  %v71_v21 = vshrl.u32 %v70_v18, 7  ;;  %s624_s1 = smov [#allocation7]   ;;  %vm383_vm2 = vcmask 57344  }
  0x2a   :  { %v48_v8 = vld [vmem:[#allocation5 + $0x10] sm:$0xff]  ;;  %457 = vmatprep.mubr.msk.f32.mxu0 %vm190_vm0, %v162_v11  ;;  %v166_v12 = vld [vmem:[#allocation5 + $0x60] sm:$0xff]  ;;  %v167_v14 = vld [vmem:[#allocation5 + $0x68] sm:$0xff]  ;;  %s407_s10 = sshll.u32 %s624_s1, 4  ;;  %s408_s10 = int_to_ptr.vmem [resolvable:$true] %s407_s10 }
  0x2b   :  { %v168_v13 = vld [vmem:[#allocation5 + $0x70] sm:$0xff]  ;;  %v366_v15 = vld [vmem:[#allocation5 + $0x88] sm:$0x1]  ;;  %v169_v16 = vld [vmem:[#allocation5 + $0x78] sm:$0xff]  ;;  %v72_v24 = vsub.s32 0, %v71_v21  ;;  %v120_v29 = vsub.s32 1, %v71_v21  ;;  %p567_p3 = scmp.lt.s32.totalorder %s408_s10, %s408_s10 }
  0x2c   :  { %v367_v17 = vld [vmem:[#allocation5 + $0x89] sm:$0x1]  ;;  %v41_v25 = vld [vmem:[#allocation2] sm:$0x7]  ;;  %v148_v31 = vsub.s32 2, %v71_v21  ;;  %s562_s11 = scalar_lea.vmem %s408_s10, 16 }
  0x2d   :  { %57 = vperm.xlu0 %500, %v47_v3   ;;  %85 = vperm.xlu1 %501, %v43_v4   ;;  %v73_v28 = vrot.slane %v41_v25, %v72_v24  ;;  %v121_v34 = vrot.slane %v41_v25, %v120_v29  ;;  %v165_v11 = vld [vmem:[#allocation5 + $0x58] sm:$0xff]  ;;  %p563_p2 = scmp.ne.s32.totalorder %s408_s10, %s562_s11  ;;  %s566_s12 = scalar_lea.vmem %s408_s10, 32 }
  0x2e   :  { %v149_v35 = vrot.slane %v41_v25, %v148_v31  ;;  %p568_p4 = scmp.lt.s32.totalorder %s566_s12, %s562_s11 }
  0x30   :  { %p569_p5 = por %p568_p4, %p567_p3 }
  0x31   :  { %67 = vperm.xlu0 %500, %v49_v5   ;;  %502 = vset.pattern.permute.xlu1 %v619_v6 }
  0x32   :  { %107 = vperm.xlu1 %502, %v47_v3   ;;  %p570_p6 = pnand %p569_p5, %p563_p2 }
  0x35   :  { %90 = vperm.xlu0 %500, %v44_v7  }
  0x36   :  { %503 = vset.pattern.permute.xlu1 %v618_v0 }
  0x37   :  { %62 = vperm.xlu1 %503, %v48_v8  }
  0x39   :  { %505 = vset.pattern.permute.xlu0 %v619_v6 }
  0x3a   :  { %103 = vperm.xlu0 %505, %v46_v1  }
  0x3b   :  { %504 = vset.pattern.permute.xlu1 %v620_v9 }
  0x3c   :  { %131 = vperm.xlu1 %504, %v46_v1  }
  0x3e   :  { %111 = vperm.xlu0 %505, %v48_v8  }
  0x40   :  { %135 = vperm.xlu1 %504, %v47_v3  }
  0x42   :  { %509 = vset.pattern.permute.xlu0 %v620_v9 }
  0x43   :  { %143 = vperm.xlu0 %509, %v49_v5  }
  0x44   :  { %506 = vset.pattern.permute.xlu1 %v618_v0 }
  0x45   :  { %95 = vperm.xlu1 %506, %v45_v10   ;;  %v164_v10 = vld [vmem:[#allocation5 + $0x50] sm:$0xff] }
  0x47   :  { %511 = vset.pattern.permute.xlu0 %v618_v0 }
  0x48   :  { %182 = vperm.xlu0 %511, %v168_v13   ;;  %v623_v13 = vmov 0.0  }
  0x49   :  { %507 = vset.pattern.permute.xlu1 %v619_v6  ;;  %471 = vmatprep.mubr.msk.f32.mxu1 %vm622_vm1, %v623_v13 }
  0x4a   :  { %115 = vperm.xlu1 %507, %v49_v5  }
  0x4c   :  { %370 = vperm.xlu0 %511, %v366_v15  }
  0x4e   :  { %508 = vset.pattern.permute.xlu1 %v620_v9  ;;  %v163_v9 = vld [vmem:[#allocation5 + $0x48] sm:$0xff] }
  0x4f   :  { %139 = vperm.xlu1 %508, %v48_v8  }
  0x53   :  { %510 = vset.pattern.permute.xlu1 %v618_v0 }
  0x54   :  { %172 = vperm.xlu1 %510, %v166_v12   ;;  %v621_v12 = vmov 0.0|0.0  }
  0x55   :  { %482 = vmatprep.subr.bf16.mxu1 %v621_v12 }
  0x58   :  { %177 = vperm.xlu1 %510, %v167_v14  }
  0x5c   :  { %187 = vperm.xlu1 %510, %v169_v16  }
  0x60   :  { %376 = vperm.xlu1 %510, %v367_v17  }
  0xa8   :  { %v53_v19 = vpop.permute.xlu0 %52  ;;  %v81_v20 = vpop.permute.xlu1 %80 }
  0xa9   :  { %v74_v32 = vmul.f32 %v73_v28, %v53_v19 }
  0xab   :  { %v98_v37 = vadd.f32 %v81_v20, %v74_v32  ;;  %v292_v32 = vld [vmem:[#allocation5 + $0x80] sm:$0xff] }
  0xac   :  { %v58_v22 = vpop.permute.xlu0 %57  ;;  %v86_v23 = vpop.permute.xlu1 %85 }
  0xad   :  { %v75_v38 = vmul.f32 %v73_v28, %v58_v22 }
  0xaf   :  { %v99_v44 = vadd.f32 %v86_v23, %v75_v38 }
  0xb0   :  { %v68_v26 = vpop.permute.xlu0 %67 }
  0xb1   :  { %v108_v27 = vpop.permute.xlu1 %107  ;;  %v77_v55 = vmul.f32 %v73_v28, %v68_v26 }
  0xb2   :  { %v123_v41 = vmul.f32 %v121_v34, %v108_v27 }
  0xb4   :  { %v91_v30 = vpop.permute.xlu0 %90  ;;  %v127_v46 = vadd.f32 %v123_v41, %v99_v44 }
  0xb6   :  { %v63_v33 = vpop.permute.xlu1 %62 }
  0xb7   :  { %v76_v57 = vmul.f32 %v73_v28, %v63_v33 }
  0xb9   :  { %v104_v36 = vpop.permute.xlu0 %103  ;;  %v100_v0 = vadd.f32 %v91_v30, %v76_v57 }
  0xba   :  { %v122_v39 = vmul.f32 %v121_v34, %v104_v36 }
  0xbb   :  { %v132_v40 = vpop.permute.xlu1 %131 }
  0xbc   :  { %v126_v42 = vadd.f32 %v122_v39, %v98_v37  ;;  %v150_v43 = vmul.f32 %v149_v35, %v132_v40 }
  0xbd   :  { %v112_v51 = vpop.permute.xlu0 %111 }
  0xbe   :  { %v154_v47 = vadd.f32 %v150_v43, %v126_v42  ;;  %v124_v61 = vmul.f32 %v121_v34, %v112_v51 }
  0xbf   :  { %v136_v45 = vpop.permute.xlu1 %135 }
  0xc0   :  { %v151_v48 = vmul.f32 %v149_v35, %v136_v45  ;;  %v158_v50 = vmax.f32 %v154_v47, 0.0  ;;  %v128_v2 = vadd.f32 %v124_v61, %v100_v0 }
  0xc2   :  { %v155_v49 = vadd.f32 %v151_v48, %v127_v46  ;;  %v144_v56 = vpop.permute.xlu0 %143 }
  0xc3   :  { %v153_v62 = vmul.f32 %v149_v35, %v144_v56 }
  0xc4   :  { %v159_v52 = vmax.f32 %v155_v49, 0.0  ;;  %v96_v53 = vpop.permute.xlu1 %95 }
  0xc5   :  { %v101_v59 = vadd.f32 %v96_v53, %v77_v55 }
  0xc6   :  { %v474_v54 = vpack.c.bf16 %v159_v52, %v158_v50 }
  0xc7   :  { %v183_v24 = vpop.permute.xlu0 %182 }
  0xc8   :  { %475 = vmatprep.subr.bf16.mxu0 %v474_v54 }
  0xc9   :  { %v116_v58 = vpop.permute.xlu1 %115  ;;  %477 = vmatpush3.bf16.msra.mxu0 %v474_v54 }
  0xca   :  { %v125_v60 = vmul.f32 %v121_v34, %v116_v58 }
  0xcc   :  { %v129_v63 = vadd.f32 %v125_v60, %v101_v59 }
  0xce   :  { %v140_v1 = vpop.permute.xlu1 %139  ;;  %v157_v3 = vadd.f32 %v153_v62, %v129_v63 }
  0xcf   :  { %v152_v4 = vmul.f32 %v149_v35, %v140_v1  ;;  %v371_v35 = vpop.permute.xlu0 %370 }
  0xd0   :  { %v161_v6 = vmax.f32 %v157_v3, 0.0 }
  0xd1   :  { %v156_v5 = vadd.f32 %v152_v4, %v128_v2 }
  0xd3   :  { %v160_v7 = vmax.f32 %v156_v5, 0.0  ;;  %v173_v14 = vpop.permute.xlu1 %172 }
  0xd5   :  { %v478_v8 = vpack.c.bf16 %v161_v6, %v160_v7 }
  0xd7   :  { %479 = vmatprep.subr.bf16.mxu0 %v478_v8  ;;  %v178_v15 = vpop.permute.xlu1 %177 }
  0xd8   :  { %481 = vmatpush3.bf16.msra.mxu0 %v478_v8 }
  0xdb   :  { %458 = vmatmul.mubr.msk.f32.vlgmr.msra.gmra.mrb[0].mxu0 %vm190_vm0, %v163_v9  ;;  %v188_v21 = vpop.permute.xlu1 %187 }
  0xdc   :  { %460 = vmatprep.mubr.msk.f32.mxu0 %vm190_vm0, %v164_v10 }
  0xdf   :  { %461 = vmatmul.mubr.msk.f32.gmra.mrb[2].mxu0 %vm190_vm0, %v165_v11  ;;  %v377_v33 = vpop.permute.xlu1 %376 }
  0xe0   :  { %v378_v34 = vrot.slane %v377_v33, 7 }
 0x1ae   :  { %v459_v16 = vpop.f32.mrb[0].mxu0 }
 0x1af   :  { %v275_v17 = vadd.f32 %v459_v16, %v178_v15  ;;  %v269_v18 = vpop.f32.mrb[1].mxu0 }
 0x1b0   :  { %v270_v19 = vadd.f32 %v269_v18, %v173_v14 }
 0x1b1   :  { %v289_v20 = vmax.f32 %v275_v17, 0.0 }
 0x1b2   :  { %v288_v22 = vmax.f32 %v270_v19, 0.0  ;;  %v462_v23 = vpop.f32.mrb[2].mxu0 }
 0x1b3   :  { %v285_v25 = vadd.f32 %v462_v23, %v188_v21  ;;  %v279_v26 = vpop.f32.mrb[3].mxu0 }
 0x1b4   :  { %v280_v27 = vadd.f32 %v279_v26, %v183_v24  ;;  %v483_v28 = vpack.c.bf16 %v289_v20, %v288_v22 }
 0x1b5   :  { %v291_v29 = vmax.f32 %v285_v25, 0.0 }
 0x1b6   :  { %v290_v30 = vmax.f32 %v280_v27, 0.0  ;;  %484 = vmatpush3.bf16.msra.mxu1 %v483_v28 }
 0x1b7   :  { %485 = vmatprep.subr.bf16.mxu1 %v621_v12 }
 0x1b8   :  { %v486_v31 = vpack.c.bf16 %v291_v29, %v290_v30 }
 0x1ba   :  { %487 = vmatpush3.bf16.msra.mxu1 %v486_v31 }
 0x1bd   :  { %472 = vmatmul.mubr.msk.f32.vlgmr.msra.gmra.mrb[0].mxu1 %vm190_vm0, %v292_v32 }
 0x290   :  { %v362_v36 = vpop.f32.mrb[0].mxu1 }
 0x291   :  { %v373_v37 = vadd.f32 %v371_v35, %v362_v36  ;;  %v380_v38 = vadd.f32 %v378_v34, %v362_v36  ;;  %v473_v39 = vpop.f32.mrb[1].mxu1 }
 0x293   :  { %512 = vtanh.f32 %v373_v37  ;;  %v386_v40 = vmin.f32 %v380_v38, 20.0 }
 0x295   :  { %v387_v41 = vmul.f32 1.442695, %v386_v40 }
 0x297   :  { %514 = vpow2.f32 %v387_v41 }
 0x29d   :  { %v513_v42 = vpop.eup %512 }
 0x29e   :  { %v382_v43 = vmul.f32 2.0, %v513_v42 }
 0x2a0   :  { %384 = vst.msk [vmem:[#allocation7] sm:$0x1] %vm383_vm2, %v382_v43 }
 0x2a1   :  { %v515_v44 = vpop.eup %514 }
 0x2a2   :  { %573 = shalt.err (!%p570_p6)
}
 0x2a3   :  { %s574_s15 = scalar_lea.hbm %s708_s2, 16 }
 0x2a4   :  { %p575_p7 = scmp.ne.s32.totalorder %s708_s2, %s574_s15  ;;  %p578_p8 = scmp.lt.u32.totalorder %s574_s15, %s708_s2 }
 0x2a6   :  { %p580_p9 = pnand %p578_p8, %p575_p7 }
 0x2a8   :  { %583 = shalt.err (!%p580_p9)
}
 0x2a9   :  { %410 = dma.vmem_to_hbm [thread:$0]  %s408_s10, 16, %s708_s2, [#allocation4]   ;;  %v389_v45 = vadd.f32 1.0, %v515_v44  ;;  %v392_v46 = vmul.f32 -0.5, %v515_v44  ;;  %v395_v48 = vand.u32 2147483647, %v515_v44 }
 0x2aa   :  { %s625_s22 = smov [#allocation8]   ;;  %vm399_vm4 = vcmask 58369   ;;  %vm385_vm5 = vcmp.gt.f32.partialorder %v380_v38, 20.0 }
 0x2ab   :  { %516 = vlog2.f32 %v389_v45  ;;  %v393_v47 = vadd.f32 1.0, %v392_v46  ;;  %s417_s23 = sshll.u32 %s625_s22, 4  ;;  %vm396_vm3 = vcmp.lt.f32.partialorder %v395_v48, 0.0004427343  ;;  %s418_s23 = int_to_ptr.vmem [resolvable:$true] %s417_s23 }
 0x2ac   :  { %s584_s24 = scalar_lea.vmem %s418_s23, 16  ;;  %s588_s2 = scalar_lea.vmem %s418_s23, 32 }
 0x2ad   :  { %v394_v51 = vmul.f32 %v515_v44, %v393_v47  ;;  %p585_p10 = scmp.ne.s32.totalorder %s418_s23, %s584_s24  ;;  %p589_p11 = scmp.lt.s32.totalorder %s418_s23, %s418_s23 }
 0x2ae   :  { %p590_p12 = scmp.lt.s32.totalorder %s588_s2, %s584_s24 }
 0x2b0   :  { %p591_p13 = por %p590_p12, %p589_p11 }
 0x2b2   :  { %p592_p0 = pnand %p591_p13, %p585_p10 }
 0x2b5   :  { %v517_v49 = vpop.eup %516 }
 0x2b6   :  { %v391_v50 = vmul.f32 0.6931472, %v517_v49 }
 0x2b8   :  { %v397_v52 = vsel %vm396_vm3, %v394_v51, %v391_v50 }
 0x2b9   :  { %v398_v53 = vsel %vm385_vm5, %v380_v38, %v397_v52 }
 0x2ba   :  { %400 = vst.msk [vmem:[#allocation8 - $0x1] sm:$0x2] %vm399_vm4, %v398_v53 }
 0x2bb   :  { %595 = shalt.err (!%p592_p0)
}
 0x2bc   :  { %s596_s27 = scalar_lea.hbm %s709_s3, 16 }
 0x2bd   :  { %p597_p1 = scmp.ne.s32.totalorder %s709_s3, %s596_s27  ;;  %p600_p2 = scmp.lt.u32.totalorder %s596_s27, %s709_s3 }
 0x2bf   :  { %p602_p3 = pnand %p600_p2, %p597_p1 }
 0x2c1   :  { %605 = shalt.err (!%p602_p3)
}
 0x2c2   :  { %420 = dma.vmem_to_hbm [thread:$0]  %s418_s23, 16, %s709_s3, [#allocation9]  }
 0x2c3   :  { %610 = dma.done.wait [#allocation4], 16  }
 0x2c4   :  { %611 = vsyncadd [#allocation4], 4294967280 }
 0x2c5   :  { %612 = dma.done.wait [#allocation9], 16  }
 0x2c6   :  { %613 = vsyncadd [#allocation9], 4294967280 }
 0x2c7   :  { %427 = vsyncpa [#allocation3], 1 }
 0x2c8   :  { %428 = vsyncpa [#allocation6], 1 }
 0x2c9   :  { %429 = vsyncpa [#allocation4], 1 }
 0x2ca   :  { %430 = vsyncpa [#allocation9], 1 }

</bundles_post_ra>
